<compile_context>
chip_gen: v6e
topology: v6e:2x2x1
jax: 0.10.0
libtpu: 0.0.40
codegen_flags: <defaults>
</compile_context>

<pallas_src>
import functools
import math

import jax
import jax.numpy as jnp
from jax.experimental import pallas as pl
from jax.experimental.pallas import tpu as pltpu


def _softplus(z):
    # numerically-stable single-exp softplus, matches F.softplus semantics
    return jnp.maximum(z, 0.0) + jnp.log1p(jnp.exp(-jnp.abs(z)))


def dynamics_kernel(
    x_ref,       # (O, TB)      f32   observations (transposed: batch on lanes)
    a_ref,       # (A, TB)      f32   actions
    es_ref,      # (O, TB)      f32   eps_state
    er_ref,      # (1, TB)      f32   eps_reward
    w1x_ref,     # (2H, O)      bf16  layer-1 weight, x part, rows [state | reward]
    w1a_ref,     # (2H, A)      bf16  layer-1 weight, action part
    w2_ref,      # (2H, 2H)     bf16  block-diag layer-2 of both encoders
    wh_ref,      # (2, O+1, 2H) bf16  [0]=mu head, [1]=logstd head (rows [state | reward])
    b12_ref,     # (2, 2H, 1)   f32   [0]=b1, [1]=b2
    scal_ref,    # (4, O+1, 1)  f32   [0]=b_mu, [1]=b_logstd, [2]=max_logstd, [3]=min_logstd
    out_ref,     # (O+1, TB)    f32   rows [next_x | next_reward]   (lane-dense in batch)
    *,
    obs_dim,
):
    O = obs_dim
    xt = x_ref[...]                                    # (O, TB) f32, reused for residual

    # --- layer 1 of both encoders (split x / a inputs: no [x|a] concat anywhere) ---
    h1 = (jnp.dot(w1x_ref[...], xt.astype(jnp.bfloat16),
                  preferred_element_type=jnp.float32)
          + jnp.dot(w1a_ref[...], a_ref[...].astype(jnp.bfloat16),
                    preferred_element_type=jnp.float32)
          + b12_ref[0])
    h1 = jnp.maximum(h1, 0.0).astype(jnp.bfloat16)     # (2H, TB)

    # --- layer 2 (block-diagonal fusion of state / reward encoders) ---
    h2 = jnp.dot(w2_ref[...], h1, preferred_element_type=jnp.float32) + b12_ref[1]
    h2 = jnp.maximum(h2, 0.0).astype(jnp.bfloat16)     # (2H, TB)

    # --- heads: mu / logstd, rows [state_* (O) | reward_* (1)] ---
    mu = jnp.dot(wh_ref[0], h2, preferred_element_type=jnp.float32) + scal_ref[0]
    logstd = jnp.dot(wh_ref[1], h2, preferred_element_type=jnp.float32) + scal_ref[1]

    # soft clamp of logstd between learnable max/min bounds
    max_logstd = scal_ref[2]                           # (O+1, 1), lane-broadcast
    min_logstd = scal_ref[3]
    logstd = max_logstd - _softplus(max_logstd - logstd)
    logstd = min_logstd + _softplus(logstd - min_logstd)
    std = jnp.exp(logstd)

    # --- reparameterized sample; sliced stores (no zeros vreg / lane concat) ---
    out_ref[:O, :] = xt + mu[:O, :] + std[:O, :] * es_ref[...]   # next_x rows
    out_ref[O:, :] = mu[O:, :] + std[O:, :] * er_ref[...]        # next_reward row


def _round_up(n: int, m: int) -> int:
    return ((n + m - 1) // m) * m


def _choose_tile(B: int, tile_b_max: int):
    """Pick (tile, padded_B). Small B -> one full-array tile (no 128 constraint, no
    padding). Larger B -> >=2 grid steps (v7x megacore) with 128-aligned tiles."""
    if B <= 128:
        return B, B
    tb_cap = max(128, (tile_b_max // 128) * 128)
    n_tiles = max(2, -(-B // tb_cap))
    tb = _round_up(-(-B // n_tiles), 128)
    return tb, n_tiles * tb


@functools.partial(jax.jit, static_argnames=("tile_b",))
def dynamics_forward(x, action, params, eps_state, eps_reward, *, tile_b=8192):
    """forward(x, action) -> (next_x, next_reward).

    params: fused tuple (w1x, w1a, w2, whead, b12, scal) from fuse_params().
    eps_*: standard-normal reparameterization noise (Normal.rsample).
    """
    w1x, w1a, w2, whead, b12, scal = params
    B, O = x.shape
    A = action.shape[1]

    # transpose so batch sits on the lane (last) axis: lane-dense vregs & stores.
    xt = x.T.astype(jnp.float32)                              # (O, B)
    at = action.T.astype(jnp.float32)                         # (A, B)
    est = eps_state.T.astype(jnp.float32)                     # (O, B)
    ert = jnp.reshape(eps_reward.astype(jnp.float32), (1, B))  # (1, B)

    tb, bp = _choose_tile(B, tile_b)
    if bp != B:
        pad = ((0, 0), (0, bp - B))
        xt = jnp.pad(xt, pad)
        at = jnp.pad(at, pad)
        est = jnp.pad(est, pad)
        ert = jnp.pad(ert, pad)

    def act_spec(feat):
        return pl.BlockSpec((feat, tb), lambda i: (0, i))

    def full_spec(shape):
        # full-array block, VMEM-resident across all grid steps
        return pl.BlockSpec(shape, lambda i: (0,) * len(shape))

    out_t = pl.pallas_call(
        functools.partial(dynamics_kernel, obs_dim=O),
        out_shape=jax.ShapeDtypeStruct((O + 1, bp), jnp.float32),
        grid_spec=pltpu.PrefetchScalarGridSpec(
            num_scalar_prefetch=0,
            grid=(bp // tb,),
            in_specs=[
                act_spec(O),            # x (transposed)
                act_spec(A),            # action
                act_spec(O),            # eps_state
                act_spec(1),            # eps_reward
                full_spec(w1x.shape),
                full_spec(w1a.shape),
                full_spec(w2.shape),
                full_spec(whead.shape),
                full_spec(b12.shape),
                full_spec(scal.shape),
            ],
            out_specs=pl.BlockSpec((O + 1, tb), lambda i: (0, i)),
        ),
        compiler_params=pltpu.CompilerParams(
            dimension_semantics=("parallel",),       # >=2 steps when B > 128 -> v7x megacore
            vmem_limit_bytes=48 * 1024 * 1024,       # headroom under v7x's 64 MiB physical
        ),
    )(xt, at, est, ert, w1x, w1a, w2, whead, b12, scal)

    next_x = out_t[:O, :B].T                          # (B, O)
    next_reward = out_t[O:, :B].T                     # (B, 1)
    return next_x, next_reward


# ---------------------------------------------------------------------------
# Deterministic parameter construction (synthetic init, no checkpoint loading)
# ---------------------------------------------------------------------------
def _spectral_normalize(w):
    # exact largest singular value; torch.nn.utils.spectral_norm uses a running
    # power-iteration estimate, so values may drift slightly from a torch ckpt.
    return w / jnp.linalg.norm(w, ord=2)


def _linear_params(key, fan_in, fan_out, spectral=False):
    kw, kb = jax.random.split(key)
    bound = 1.0 / math.sqrt(fan_in)
    w = jax.random.uniform(kw, (fan_in, fan_out), jnp.float32, -bound, bound)
    b = jax.random.uniform(kb, (1, fan_out), jnp.float32, -bound, bound)
    if spectral:
        w = _spectral_normalize(w)
    return w, b


def build_raw_params(key, obs_dim, act_dim, hidden):
    keys = jax.random.split(key, 8)
    raw = {}
    raw["s_w1"], raw["s_b1"] = _linear_params(keys[0], obs_dim + act_dim, hidden, True)
    raw["s_w2"], raw["s_b2"] = _linear_params(keys[1], hidden, hidden, True)
    raw["r_w1"], raw["r_b1"] = _linear_params(keys[2], obs_dim + act_dim, hidden, True)
    raw["r_w2"], raw["r_b2"] = _linear_params(keys[3], hidden, hidden, True)
    raw["smu_w"], raw["smu_b"] = _linear_params(keys[4], hidden, obs_dim, True)
    raw["slog_w"], raw["slog_b"] = _linear_params(keys[5], hidden, obs_dim, False)
    raw["rmu_w"], raw["rmu_b"] = _linear_params(keys[6], hidden, 1, True)
    raw["rlog_w"], raw["rlog_b"] = _linear_params(keys[7], hidden, 1, False)
    raw["state_max_logstd"] = jnp.full((1, obs_dim), 2.0, jnp.float32)
    raw["state_min_logstd"] = jnp.full((1, obs_dim), -10.0, jnp.float32)
    raw["reward_max_logstd"] = jnp.full((1, 1), 2.0, jnp.float32)
    raw["reward_min_logstd"] = jnp.full((1, 1), -10.0, jnp.float32)
    return raw


def fuse_params(raw, obs_dim, act_dim, hidden, matmul_dtype=jnp.bfloat16):
    """Fuse the 10 linears into the transposed (W.T @ Z) kernel layout."""
    O, A, H = obs_dim, act_dim, hidden
    zOH = jnp.zeros((O, H), jnp.float32)
    z1H = jnp.zeros((1, H), jnp.float32)
    zHH = jnp.zeros((H, H), jnp.float32)

    # layer 1: h1 = W1x @ x_t + W1a @ a_t + b1,  rows [state | reward]
    w1x = jnp.concatenate([raw["s_w1"][:O].T, raw["r_w1"][:O].T], axis=0)   # (2H, O)
    w1a = jnp.concatenate([raw["s_w1"][O:].T, raw["r_w1"][O:].T], axis=0)   # (2H, A)
    b1 = jnp.concatenate([raw["s_b1"].T, raw["r_b1"].T], axis=0)            # (2H, 1)

    # layer 2: block-diagonal
    w2 = jnp.block([[raw["s_w2"].T, zHH], [zHH, raw["r_w2"].T]])            # (2H, 2H)
    b2 = jnp.concatenate([raw["s_b2"].T, raw["r_b2"].T], axis=0)            # (2H, 1)

    # heads: mu / logstd, rows [state (O) | reward (1)]
    wmu = jnp.block([[raw["smu_w"].T, zOH], [z1H, raw["rmu_w"].T]])         # (O+1, 2H)
    wlog = jnp.block([[raw["slog_w"].T, zOH], [z1H, raw["rlog_w"].T]])      # (O+1, 2H)
    bmu = jnp.concatenate([raw["smu_b"].T, raw["rmu_b"].T], axis=0)         # (O+1, 1)
    blog = jnp.concatenate([raw["slog_b"].T, raw["rlog_b"].T], axis=0)
    maxl = jnp.concatenate([raw["state_max_logstd"].T, raw["reward_max_logstd"].T], axis=0)
    minl = jnp.concatenate([raw["state_min_logstd"].T, raw["reward_min_logstd"].T], axis=0)

    whead = jnp.stack([wmu, wlog], axis=0)                                  # (2, O+1, 2H)
    b12 = jnp.stack([b1, b2], axis=0)                                       # (2, 2H, 1)
    scal = jnp.stack([bmu, blog, maxl, minl], axis=0)                       # (4, O+1, 1)

    return (w1x.astype(matmul_dtype), w1a.astype(matmul_dtype),
            w2.astype(matmul_dtype), whead.astype(matmul_dtype),
            b12.astype(jnp.float32), scal.astype(jnp.float32))


# ---------------------------------------------------------------------------
# Pure-JAX reference (unfused, same bf16 matmul precision) for correctness check
# ---------------------------------------------------------------------------
def reference_forward(x, action, raw, eps_state, eps_reward, matmul_dtype=jnp.bfloat16):
    def mm(a, w):
        return jnp.dot(a.astype(matmul_dtype), w.astype(matmul_dtype),
                       preferred_element_type=jnp.float32)

    def softplus(z):
        return jnp.logaddexp(z, 0.0)

    za = jnp.concatenate([x, action], axis=1)
    state_h = jnp.maximum(mm(za, raw["s_w1"]) + raw["s_b1"], 0.0)
    state_h = jnp.maximum(mm(state_h, raw["s_w2"]) + raw["s_b2"], 0.0)
    reward_h = jnp.maximum(mm(za, raw["r_w1"]) + raw["r_b1"], 0.0)
    reward_h = jnp.maximum(mm(reward_h, raw["r_w2"]) + raw["r_b2"], 0.0)

    state_mu = mm(state_h, raw["smu_w"]) + raw["smu_b"]
    state_logstd = mm(state_h, raw["slog_w"]) + raw["slog_b"]
    state_logstd = raw["state_max_logstd"] - softplus(raw["state_max_logstd"] - state_logstd)
    state_logstd = raw["state_min_logstd"] + softplus(state_logstd - raw["state_min_logstd"])

    reward_mu = mm(reward_h, raw["rmu_w"]) + raw["rmu_b"]
    reward_logstd = mm(reward_h, raw["rlog_w"]) + raw["rlog_b"]
    reward_logstd = raw["reward_max_logstd"] - softplus(raw["reward_max_logstd"] - reward_logstd)
    reward_logstd = raw["reward_min_logstd"] + softplus(reward_logstd - raw["reward_min_logstd"])

    next_x = x + state_mu + jnp.exp(state_logstd) * eps_state
    next_r = (reward_mu + jnp.exp(reward_logstd) * eps_reward).reshape(-1, 1)
    return next_x, next_r


def _check(B, OBS, ACT, raw, params, seed):
    kx, ka, kes, ker = jax.random.split(jax.random.PRNGKey(seed), 4)
    x = jax.random.normal(kx, (B, OBS), jnp.float32)
    action = jax.random.normal(ka, (B, ACT), jnp.float32)
    eps_state = jax.random.normal(kes, (B, OBS), jnp.float32)
    eps_reward = jax.random.normal(ker, (B, 1), jnp.float32)

    next_x, next_reward = dynamics_forward(x, action, params, eps_state, eps_reward)
    jax.block_until_ready((next_x, next_reward))

    assert next_x.shape == (B, OBS) and next_reward.shape == (B, 1)
    assert bool(jnp.all(jnp.isfinite(next_x))) and bool(jnp.all(jnp.isfinite(next_reward)))

    ref_x, ref_r = reference_forward(x, action, raw, eps_state, eps_reward)
    assert bool(jnp.allclose(next_x, ref_x, rtol=1e-2, atol=1e-2)), "next_x mismatch vs reference"
    assert bool(jnp.allclose(next_reward, ref_r, rtol=1e-2, atol=1e-2)), "next_reward mismatch vs reference"


if __name__ == "__main__":
    OBS, ACT, HID = 8, 4, 32

    key = jax.random.PRNGKey(0)
    raw = build_raw_params(key, OBS, ACT, HID)
    params = fuse_params(raw, OBS, ACT, HID)

    # small batch: single full-array tile path (no padding)
    _check(8, OBS, ACT, raw, params, seed=0)
    # moderate batch: multi-tile path (>=2 grid steps, 128-aligned tiles, tail padding)
    _check(300, OBS, ACT, raw, params, seed=1)

    print("KERNEL_OK")
</pallas_src>

<mosaic_0001>
module attributes {stable_mosaic.version = 11 : i64} {
  func.func @dynamics_kernel(%arg0: i32, %arg1: memref<8x8xf32, #tpu.memory_space<vmem>>, %arg2: memref<4x8xf32, #tpu.memory_space<vmem>>, %arg3: memref<8x8xf32, #tpu.memory_space<vmem>>, %arg4: memref<1x8xf32, #tpu.memory_space<vmem>>, %arg5: memref<64x8xbf16, #tpu.memory_space<vmem>>, %arg6: memref<64x4xbf16, #tpu.memory_space<vmem>>, %arg7: memref<64x64xbf16, #tpu.memory_space<vmem>>, %arg8: memref<2x9x64xbf16, #tpu.memory_space<vmem>>, %arg9: memref<2x64x1xf32, #tpu.memory_space<vmem>>, %arg10: memref<4x9x1xf32, #tpu.memory_space<vmem>>, %arg11: memref<9x8xf32, #tpu.memory_space<vmem>>) attributes {dimension_semantics = [#tpu.dimension_semantics<parallel>], iteration_bounds = array<i64: 1>, scalar_prefetch = 0 : i64, scratch_operands = 0 : i64, tpu.core_type = #tpu.core_type<tc>, window_params = [{transform_indices = @transform_0, window_bounds = array<i64: 8, 8>}, {transform_indices = @transform_1, window_bounds = array<i64: 4, 8>}, {transform_indices = @transform_2, window_bounds = array<i64: 8, 8>}, {transform_indices = @transform_3, window_bounds = array<i64: 1, 8>}, {pipeline_mode = #tpu.pipeline_mode<synchronous>, transform_indices = @transform_4, window_bounds = array<i64: 64, 8>}, {pipeline_mode = #tpu.pipeline_mode<synchronous>, transform_indices = @transform_5, window_bounds = array<i64: 64, 4>}, {pipeline_mode = #tpu.pipeline_mode<synchronous>, transform_indices = @transform_6, window_bounds = array<i64: 64, 64>}, {pipeline_mode = #tpu.pipeline_mode<synchronous>, transform_indices = @transform_7, window_bounds = array<i64: 2, 9, 64>}, {pipeline_mode = #tpu.pipeline_mode<synchronous>, transform_indices = @transform_8, window_bounds = array<i64: 2, 64, 1>}, {pipeline_mode = #tpu.pipeline_mode<synchronous>, transform_indices = @transform_9, window_bounds = array<i64: 4, 9, 1>}, {transform_indices = @transform_10, window_bounds = array<i64: 9, 8>}]} {
    %c0 = arith.constant 0 : index
    %c0_0 = arith.constant 0 : index
    %0 = vector.load %arg1[%c0, %c0_0] : memref<8x8xf32, #tpu.memory_space<vmem>>, vector<8x8xf32>
    %c0_1 = arith.constant 0 : index
    %c0_2 = arith.constant 0 : index
    %1 = vector.load %arg5[%c0_1, %c0_2] : memref<64x8xbf16, #tpu.memory_space<vmem>>, vector<64x8xbf16>
    %2 = arith.truncf %0 : vector<8x8xf32> to vector<8x8xbf16>
    %cst = arith.constant dense<0.000000e+00> : vector<64x8xf32>
    %3 = tpu.matmul %1, %2, %cst {dimension_numbers = #tpu.dot_dimension_numbers<[1], [0], [0], [1], [0, 0, 1, 1], [], []>} : vector<64x8xbf16>, vector<8x8xbf16>, vector<64x8xf32> -> vector<64x8xf32>
    %c0_3 = arith.constant 0 : index
    %c0_4 = arith.constant 0 : index
    %4 = vector.load %arg6[%c0_3, %c0_4] : memref<64x4xbf16, #tpu.memory_space<vmem>>, vector<64x4xbf16>
    %c0_5 = arith.constant 0 : index
    %c0_6 = arith.constant 0 : index
    %5 = vector.load %arg2[%c0_5, %c0_6] : memref<4x8xf32, #tpu.memory_space<vmem>>, vector<4x8xf32>
    %6 = arith.truncf %5 : vector<4x8xf32> to vector<4x8xbf16>
    %cst_7 = arith.constant dense<0.000000e+00> : vector<64x8xf32>
    %7 = tpu.matmul %4, %6, %cst_7 {dimension_numbers = #tpu.dot_dimension_numbers<[1], [0], [0], [1], [0, 0, 1, 1], [], []>} : vector<64x4xbf16>, vector<4x8xbf16>, vector<64x8xf32> -> vector<64x8xf32>
    %8 = arith.addf %3, %7 : vector<64x8xf32>
    %c0_8 = arith.constant 0 : index
    %c0_9 = arith.constant 0 : index
    %c0_10 = arith.constant 0 : index
    %9 = vector.load %arg9[%c0_8, %c0_9, %c0_10] : memref<2x64x1xf32, #tpu.memory_space<vmem>>, vector<1x64x1xf32>
    %10 = vector.shape_cast %9 : vector<1x64x1xf32> to vector<64x1xf32>
    %11 = vector.broadcast %10 : vector<64x1xf32> to vector<64x8xf32>
    %12 = arith.addf %8, %11 : vector<64x8xf32>
    %cst_11 = arith.constant 0.000000e+00 : f32
    %13 = vector.broadcast %cst_11 : f32 to vector<64x8xf32>
    %14 = arith.maximumf %12, %13 : vector<64x8xf32>
    %15 = arith.truncf %14 : vector<64x8xf32> to vector<64x8xbf16>
    %c0_12 = arith.constant 0 : index
    %c0_13 = arith.constant 0 : index
    %16 = vector.load %arg7[%c0_12, %c0_13] : memref<64x64xbf16, #tpu.memory_space<vmem>>, vector<64x64xbf16>
    %cst_14 = arith.constant dense<0.000000e+00> : vector<64x8xf32>
    %17 = tpu.matmul %16, %15, %cst_14 {dimension_numbers = #tpu.dot_dimension_numbers<[1], [0], [0], [1], [0, 0, 1, 1], [], []>} : vector<64x64xbf16>, vector<64x8xbf16>, vector<64x8xf32> -> vector<64x8xf32>
    %c1 = arith.constant 1 : index
    %c0_15 = arith.constant 0 : index
    %c0_16 = arith.constant 0 : index
    %18 = vector.load %arg9[%c1, %c0_15, %c0_16] : memref<2x64x1xf32, #tpu.memory_space<vmem>>, vector<1x64x1xf32>
    %19 = vector.shape_cast %18 : vector<1x64x1xf32> to vector<64x1xf32>
    %20 = vector.broadcast %19 : vector<64x1xf32> to vector<64x8xf32>
    %21 = arith.addf %17, %20 : vector<64x8xf32>
    %cst_17 = arith.constant 0.000000e+00 : f32
    %22 = vector.broadcast %cst_17 : f32 to vector<64x8xf32>
    %23 = arith.maximumf %21, %22 : vector<64x8xf32>
    %24 = arith.truncf %23 : vector<64x8xf32> to vector<64x8xbf16>
    %c0_18 = arith.constant 0 : index
    %c0_19 = arith.constant 0 : index
    %c0_20 = arith.constant 0 : index
    %25 = vector.load %arg8[%c0_18, %c0_19, %c0_20] : memref<2x9x64xbf16, #tpu.memory_space<vmem>>, vector<1x9x64xbf16>
    %26 = vector.shape_cast %25 : vector<1x9x64xbf16> to vector<9x64xbf16>
    %cst_21 = arith.constant dense<0.000000e+00> : vector<9x8xf32>
    %27 = tpu.matmul %26, %24, %cst_21 {dimension_numbers = #tpu.dot_dimension_numbers<[1], [0], [0], [1], [0, 0, 1, 1], [], []>} : vector<9x64xbf16>, vector<64x8xbf16>, vector<9x8xf32> -> vector<9x8xf32>
    %c0_22 = arith.constant 0 : index
    %c0_23 = arith.constant 0 : index
    %c0_24 = arith.constant 0 : index
    %28 = vector.load %arg10[%c0_22, %c0_23, %c0_24] : memref<4x9x1xf32, #tpu.memory_space<vmem>>, vector<1x9x1xf32>
    %29 = vector.shape_cast %28 : vector<1x9x1xf32> to vector<9x1xf32>
    %30 = vector.broadcast %29 : vector<9x1xf32> to vector<9x8xf32>
    %31 = arith.addf %27, %30 : vector<9x8xf32>
    %c1_25 = arith.constant 1 : index
    %c0_26 = arith.constant 0 : index
    %c0_27 = arith.constant 0 : index
    %32 = vector.load %arg8[%c1_25, %c0_26, %c0_27] : memref<2x9x64xbf16, #tpu.memory_space<vmem>>, vector<1x9x64xbf16>
    %33 = vector.shape_cast %32 : vector<1x9x64xbf16> to vector<9x64xbf16>
    %cst_28 = arith.constant dense<0.000000e+00> : vector<9x8xf32>
    %34 = tpu.matmul %33, %24, %cst_28 {dimension_numbers = #tpu.dot_dimension_numbers<[1], [0], [0], [1], [0, 0, 1, 1], [], []>} : vector<9x64xbf16>, vector<64x8xbf16>, vector<9x8xf32> -> vector<9x8xf32>
    %c1_29 = arith.constant 1 : index
    %c0_30 = arith.constant 0 : index
    %c0_31 = arith.constant 0 : index
    %35 = vector.load %arg10[%c1_29, %c0_30, %c0_31] : memref<4x9x1xf32, #tpu.memory_space<vmem>>, vector<1x9x1xf32>
    %36 = vector.shape_cast %35 : vector<1x9x1xf32> to vector<9x1xf32>
    %37 = vector.broadcast %36 : vector<9x1xf32> to vector<9x8xf32>
    %38 = arith.addf %34, %37 : vector<9x8xf32>
    %c2 = arith.constant 2 : index
    %c0_32 = arith.constant 0 : index
    %c0_33 = arith.constant 0 : index
    %39 = vector.load %arg10[%c2, %c0_32, %c0_33] : memref<4x9x1xf32, #tpu.memory_space<vmem>>, vector<1x9x1xf32>
    %40 = vector.shape_cast %39 : vector<1x9x1xf32> to vector<9x1xf32>
    %c3 = arith.constant 3 : index
    %c0_34 = arith.constant 0 : index
    %c0_35 = arith.constant 0 : index
    %41 = vector.load %arg10[%c3, %c0_34, %c0_35] : memref<4x9x1xf32, #tpu.memory_space<vmem>>, vector<1x9x1xf32>
    %42 = vector.shape_cast %41 : vector<1x9x1xf32> to vector<9x1xf32>
    %43 = vector.broadcast %40 : vector<9x1xf32> to vector<9x8xf32>
    %44 = arith.subf %43, %38 : vector<9x8xf32>
    %cst_36 = arith.constant 0.000000e+00 : f32
    %45 = vector.broadcast %cst_36 : f32 to vector<9x8xf32>
    %46 = arith.maximumf %44, %45 : vector<9x8xf32>
    %47 = math.absf %44 : vector<9x8xf32>
    %cst_37 = arith.constant 0.000000e+00 : f32
    %48 = vector.broadcast %cst_37 : f32 to vector<9x8xf32>
    %49 = arith.subf %48, %47 : vector<9x8xf32>
    %50 = math.exp %49 : vector<9x8xf32>
    %51 = math.log1p %50 : vector<9x8xf32>
    %52 = arith.addf %46, %51 : vector<9x8xf32>
    %53 = vector.broadcast %40 : vector<9x1xf32> to vector<9x8xf32>
    %54 = arith.subf %53, %52 : vector<9x8xf32>
    %55 = vector.broadcast %42 : vector<9x1xf32> to vector<9x8xf32>
    %56 = arith.subf %54, %55 : vector<9x8xf32>
    %cst_38 = arith.constant 0.000000e+00 : f32
    %57 = vector.broadcast %cst_38 : f32 to vector<9x8xf32>
    %58 = arith.maximumf %56, %57 : vector<9x8xf32>
    %59 = math.absf %56 : vector<9x8xf32>
    %cst_39 = arith.constant 0.000000e+00 : f32
    %60 = vector.broadcast %cst_39 : f32 to vector<9x8xf32>
    %61 = arith.subf %60, %59 : vector<9x8xf32>
    %62 = math.exp %61 : vector<9x8xf32>
    %63 = math.log1p %62 : vector<9x8xf32>
    %64 = arith.addf %58, %63 : vector<9x8xf32>
    %65 = vector.broadcast %42 : vector<9x1xf32> to vector<9x8xf32>
    %66 = arith.addf %65, %64 : vector<9x8xf32>
    %67 = math.exp %66 : vector<9x8xf32>
    %68 = vector.extract_strided_slice %31 {offsets = [0, 0], sizes = [8, 8], strides = [1, 1]} : vector<9x8xf32> to vector<8x8xf32>
    %69 = arith.addf %0, %68 : vector<8x8xf32>
    %70 = vector.extract_strided_slice %67 {offsets = [0, 0], sizes = [8, 8], strides = [1, 1]} : vector<9x8xf32> to vector<8x8xf32>
    %c0_40 = arith.constant 0 : index
    %c0_41 = arith.constant 0 : index
    %71 = vector.load %arg3[%c0_40, %c0_41] : memref<8x8xf32, #tpu.memory_space<vmem>>, vector<8x8xf32>
    %72 = arith.mulf %70, %71 : vector<8x8xf32>
    %73 = arith.addf %69, %72 : vector<8x8xf32>
    %c0_42 = arith.constant 0 : index
    %c0_43 = arith.constant 0 : index
    %74 = vector.load %arg11[%c0_42, %c0_43] : memref<9x8xf32, #tpu.memory_space<vmem>>, vector<8x8xf32>
    tpu.vector_store %arg11[%c0_42, %c0_43], %73 {strides = array<i32>} : memref<9x8xf32, #tpu.memory_space<vmem>>, vector<8x8xf32>,
    %75 = vector.extract_strided_slice %31 {offsets = [8, 0], sizes = [1, 8], strides = [1, 1]} : vector<9x8xf32> to vector<1x8xf32>
    %76 = vector.extract_strided_slice %67 {offsets = [8, 0], sizes = [1, 8], strides = [1, 1]} : vector<9x8xf32> to vector<1x8xf32>
    %c0_44 = arith.constant 0 : index
    %c0_45 = arith.constant 0 : index
    %77 = vector.load %arg4[%c0_44, %c0_45] : memref<1x8xf32, #tpu.memory_space<vmem>>, vector<1x8xf32>
    %78 = arith.mulf %76, %77 : vector<1x8xf32>
    %79 = arith.addf %75, %78 : vector<1x8xf32>
    %c8 = arith.constant 8 : index
    %c0_46 = arith.constant 0 : index
    %80 = vector.load %arg11[%c8, %c0_46] : memref<9x8xf32, #tpu.memory_space<vmem>>, vector<1x8xf32>
    tpu.vector_store %arg11[%c8, %c0_46], %79 {strides = array<i32>} : memref<9x8xf32, #tpu.memory_space<vmem>>, vector<1x8xf32>,
    return
  }
  func.func @transform_0(%arg0: i32) -> (i32, i32) {
    %c0_i32 = arith.constant 0 : i32
    %c0_i32_0 = arith.constant 0 : i32
    return %c0_i32, %arg0 : i32, i32
  }
  func.func @transform_1(%arg0: i32) -> (i32, i32) {
    %c0_i32 = arith.constant 0 : i32
    %c0_i32_0 = arith.constant 0 : i32
    return %c0_i32, %arg0 : i32, i32
  }
  func.func @transform_2(%arg0: i32) -> (i32, i32) {
    %c0_i32 = arith.constant 0 : i32
    %c0_i32_0 = arith.constant 0 : i32
    return %c0_i32, %arg0 : i32, i32
  }
  func.func @transform_3(%arg0: i32) -> (i32, i32) {
    %c0_i32 = arith.constant 0 : i32
    %c0_i32_0 = arith.constant 0 : i32
    return %c0_i32, %arg0 : i32, i32
  }
  func.func @transform_4(%arg0: i32) -> (i32, i32) {
    %c0_i32 = arith.constant 0 : i32
    %c0_i32_0 = arith.constant 0 : i32
    %c0_i32_1 = arith.constant 0 : i32
    return %c0_i32, %c0_i32_0 : i32, i32
  }
  func.func @transform_5(%arg0: i32) -> (i32, i32) {
    %c0_i32 = arith.constant 0 : i32
    %c0_i32_0 = arith.constant 0 : i32
    %c0_i32_1 = arith.constant 0 : i32
    return %c0_i32, %c0_i32_0 : i32, i32
  }
  func.func @transform_6(%arg0: i32) -> (i32, i32) {
    %c0_i32 = arith.constant 0 : i32
    %c0_i32_0 = arith.constant 0 : i32
    %c0_i32_1 = arith.constant 0 : i32
    return %c0_i32, %c0_i32_0 : i32, i32
  }
  func.func @transform_7(%arg0: i32) -> (i32, i32, i32) {
    %c0_i32 = arith.constant 0 : i32
    %c0_i32_0 = arith.constant 0 : i32
    %c0_i32_1 = arith.constant 0 : i32
    %c0_i32_2 = arith.constant 0 : i32
    return %c0_i32, %c0_i32_0, %c0_i32_1 : i32, i32, i32
  }
  func.func @transform_8(%arg0: i32) -> (i32, i32, i32) {
    %c0_i32 = arith.constant 0 : i32
    %c0_i32_0 = arith.constant 0 : i32
    %c0_i32_1 = arith.constant 0 : i32
    %c0_i32_2 = arith.constant 0 : i32
    return %c0_i32, %c0_i32_0, %c0_i32_1 : i32, i32, i32
  }
  func.func @transform_9(%arg0: i32) -> (i32, i32, i32) {
    %c0_i32 = arith.constant 0 : i32
    %c0_i32_0 = arith.constant 0 : i32
    %c0_i32_1 = arith.constant 0 : i32
    %c0_i32_2 = arith.constant 0 : i32
    return %c0_i32, %c0_i32_0, %c0_i32_1 : i32, i32, i32
  }
  func.func @transform_10(%arg0: i32) -> (i32, i32) {
    %c0_i32 = arith.constant 0 : i32
    %c0_i32_0 = arith.constant 0 : i32
    return %c0_i32, %arg0 : i32, i32
  }
}

</mosaic_0001>

<bundles_post_ra>
// kernel: dynamics_forward.1
= control target key start
LH: loop header
LB: loop body
LE: loop exit
PB: predicated region body
PF: predicated region fallthrough
CT: control target
= control target key end

     0   :  { %vm89_vm0 = vcmask 1041408   ;;  %vm191_vm1 = vcmask 1043456   ;;  %vm76_vm2 = vcmask 31744   ;;  %v908_v5 = vmov 0   ;;  %s1128_s1 = inlined_call_operand.vmem [shape: f32[4,8], index: 1, kind: input, shape index: {}]   ;;  %s1129_s0 = inlined_call_operand.vmem [shape: f32[8,8], index: 0, kind: input, shape index: {}]   ;;  %s1130_s5 = inlined_call_operand.vmem [shape: bf16[64,4], index: 5, kind: input, shape index: {}]   ;;  %s1131_s4 = inlined_call_operand.vmem [shape: bf16[64,8], index: 4, kind: input, shape index: {}]   ;;  %s1132_s8 = inlined_call_operand.vmem [shape: f32[2,64,1], index: 8, kind: input, shape index: {}]   ;;  %s1133_s9 = inlined_call_operand.vmem [shape: f32[4,9,1], index: 9, kind: input, shape index: {}]   ;;  %s1134_s6 = inlined_call_operand.vmem [shape: bf16[64,64], index: 6, kind: input, shape index: {}]   ;;  %s1135_s7 = inlined_call_operand.vmem [shape: bf16[2,9,64], index: 7, kind: input, shape index: {}]   ;;  %s1136_s2 = inlined_call_operand.vmem [shape: f32[8,8], index: 2, kind: input, shape index: {}]   ;;  %s1137_s3 = inlined_call_operand.vmem [shape: f32[1,8], index: 3, kind: input, shape index: {}]   ;;  %s1138_s10 = inlined_call_operand.vmem [shape: f32[9,8], index: 10, kind: output, shape index: {}]  }
   0x1   :  { %v54_v0 = vld [vmem:[%s1128_s1] sm:$0xf]  ;;  %872 = vset.pattern.permute.xlu0 %v908_v5  ;;  %873 = vset.pattern.permute.xlu1 %v908_v5  ;;  %vm178_vm3 = vcmask 64512   ;;  %v876_v9 = vld [vmem:[%s1130_s5 + $0x8] sm:$0xff]   ;;  %v878_v11 = vld [vmem:[%s1130_s5 + $0x10] sm:$0xff]   ;;  %vm405_vm4 = vcmask 523264  }
   0x2   :  { %v972_v1 = vld [vmem:[%s1129_s0] sm:$0xff]  ;;  %v55_v2 = vpack.c.bf16 %v54_v0, %v54_v0  ;;  %v877_v10 = vld [vmem:[%s1131_s4 + $0x8] sm:$0xff]   ;;  %v879_v12 = vld [vmem:[%s1131_s4 + $0x10] sm:$0xff]   ;;  %vm910_vm5 = vmmov 0   ;;  %vm729_vm10 = vcmask 57344  }
   0x3   :  { %v45_v3 = vpack.c.bf16 %v972_v1, %v972_v1  ;;  %v874_v4 = vld [vmem:[%s1130_s5] sm:$0xff]   ;;  %v266_v13 = vld [vmem:[%s1132_s8 + $0x30] sm:$0xff]  ;;  %v267_v15 = vld [vmem:[%s1132_s8 + $0x38] sm:$0xff] }
   0x4   :  { %v875_v6 = vld [vmem:[%s1131_s4] sm:$0xff]   ;;  %867 = vmatprep.subr.msk.bf16.mxu0 %vm89_vm0, %v55_v2  ;;  %v91_v7 = vsel %vm89_vm0, %v55_v2, 0  ;;  %809 = vmatprep.mubr.msk.bf16.mxu0 %vm76_vm2, %v874_v4  ;;  %v880_v16 = vld [vmem:[%s1130_s5 + $0x18] sm:$0xff]   ;;  %v265_v18 = vld [vmem:[%s1132_s8 + $0x28] sm:$0xff] }
   0x5   :  { %868 = vmatprep.subr.msk.bf16.mxu1 %vm191_vm1, %v45_v3  ;;  %v193_v8 = vsel %vm191_vm1, %v45_v3, 0  ;;  %808 = vmatpush3.bf16.msra.mxu0 %v91_v7  ;;  %v264_v14 = vld [vmem:[%s1132_s8 + $0x20] sm:$0xff]  ;;  %v881_v17 = vld [vmem:[%s1131_s4 + $0x18] sm:$0xff]   ;;  %v262_v19 = vld [vmem:[%s1132_s8 + $0x10] sm:$0xff] }
   0x6   :  { %818 = vmatpush3.bf16.msra.mxu1 %v193_v8  ;;  %819 = vmatprep.mubr.msk.bf16.mxu1 %vm178_vm3, %v875_v6  ;;  %v263_v20 = vld [vmem:[%s1132_s8 + $0x18] sm:$0xff]  ;;  %v260_v21 = vld [vmem:[%s1132_s8] sm:$0xff]  ;;  %v261_v22 = vld [vmem:[%s1132_s8 + $0x8] sm:$0xff] }
   0x7   :  { %300 = vperm.xlu0 %872, %v266_v13   ;;  %290 = vperm.xlu1 %873, %v264_v14   ;;  %v757_v23 = vld [vmem:[%s1132_s8 + $0x70] sm:$0xff]  ;;  %v758_v24 = vld [vmem:[%s1132_s8 + $0x78] sm:$0xff]  ;;  %v755_v25 = vld [vmem:[%s1132_s8 + $0x60] sm:$0xff] }
   0x8   :  { %810 = vmatmul.mubr.msk.bf16.vlgmr.msra.gmra.mxu0 %vm76_vm2, %v876_v9  ;;  %v756_v26 = vld [vmem:[%s1132_s8 + $0x68] sm:$0xff]  ;;  %v753_v27 = vld [vmem:[%s1132_s8 + $0x50] sm:$0xff]  ;;  %v754_v28 = vld [vmem:[%s1132_s8 + $0x58] sm:$0xff] }
   0x9   :  { %820 = vmatmul.mubr.msk.bf16.vlgmr.msra.gmra.mxu1 %vm178_vm3, %v877_v10  ;;  %813 = vmatprep.mubr.msk.bf16.mxu0 %vm76_vm2, %v878_v11  ;;  %v751_v29 = vld [vmem:[%s1132_s8 + $0x40] sm:$0xff]  ;;  %v752_v30 = vld [vmem:[%s1132_s8 + $0x48] sm:$0xff]  ;;  %v771_v31 = vld [vmem:[%s1133_s9 + $0x10] sm:$0xff] }
   0xa   :  { %823 = vmatprep.mubr.msk.bf16.mxu1 %vm178_vm3, %v879_v12  ;;  %v772_v32 = vld [vmem:[%s1133_s9 + $0x18] sm:$0x1]  ;;  %v775_v33 = vld [vmem:[%s1133_s9 + $0x20] sm:$0xff]  ;;  %v776_v34 = vld [vmem:[%s1133_s9 + $0x28] sm:$0x1] }
   0xb   :  { %305 = vperm.xlu0 %872, %v267_v15   ;;  %295 = vperm.xlu1 %873, %v265_v18   ;;  %v777_v35 = vld [vmem:[%s1133_s9 + $0x30] sm:$0xff]  ;;  %v778_v36 = vld [vmem:[%s1133_s9 + $0x38] sm:$0x1]  ;;  %v497_v37 = vld [vmem:[%s1133_s9] sm:$0xff] }
   0xc   :  { %v498_v38 = vld [vmem:[%s1133_s9 + $0x8] sm:$0x1]  ;;  %v882_v39 = vld [vmem:[%s1134_s6] sm:$0xff]  }
   0xf   :  { %280 = vperm.xlu0 %872, %v262_v19   ;;  %285 = vperm.xlu1 %873, %v263_v20  }
  0x10   :  { %814 = vmatmul.mubr.msk.bf16.gmra.mxu0 %vm76_vm2, %v880_v16 }
  0x11   :  { %824 = vmatmul.mubr.msk.bf16.gmra.mxu1 %vm178_vm3, %v881_v17  ;;  %835 = vmatprep.mubr.msk.bf16.mxu0 %vm405_vm4, %v882_v39 }
  0x13   :  { %270 = vperm.xlu0 %872, %v260_v21   ;;  %275 = vperm.xlu1 %873, %v261_v22  }
  0x17   :  { %377 = vperm.xlu0 %872, %v757_v23   ;;  %382 = vperm.xlu1 %873, %v758_v24  }
  0x1b   :  { %367 = vperm.xlu0 %872, %v755_v25   ;;  %372 = vperm.xlu1 %873, %v756_v26  }
  0x1f   :  { %357 = vperm.xlu0 %872, %v753_v27   ;;  %362 = vperm.xlu1 %873, %v754_v28  }
  0x23   :  { %347 = vperm.xlu0 %872, %v751_v29   ;;  %352 = vperm.xlu1 %873, %v752_v30   ;;  %v883_v29 = vld [vmem:[%s1134_s6 + $0x8] sm:$0xff]   ;;  %v884_v30 = vld [vmem:[%s1134_s6 + $0x10] sm:$0xff]  }
  0x27   :  { %566 = vperm.xlu0 %872, %v771_v31   ;;  %571 = vperm.xlu1 %873, %v772_v32   ;;  %v885_v31 = vld [vmem:[%s1134_s6 + $0x18] sm:$0xff]   ;;  %v909_v32 = vmov 0.0  }
  0x28   :  { %843 = vmatprep.subr.bf16.mxu1 %v909_v32  ;;  %851 = vmatprep.mubr.msk.bf16.mxu1 %vm910_vm5, %v909_v32 }
  0x2b   :  { %631 = vperm.xlu0 %872, %v775_v33   ;;  %636 = vperm.xlu1 %873, %v776_v34  }
  0x2f   :  { %675 = vperm.xlu0 %872, %v777_v35   ;;  %680 = vperm.xlu1 %873, %v778_v36  }
  0x33   :  { %501 = vperm.xlu0 %872, %v497_v37   ;;  %506 = vperm.xlu1 %873, %v498_v38  }
  0x82   :  { %v291_v42 = vpop.permute.xlu1 %290  ;;  %v301_v45 = vpop.permute.xlu0 %300 }
  0x86   :  { %v296_v50 = vpop.permute.xlu1 %295  ;;  %v306_v53 = vpop.permute.xlu0 %305 }
  0x8a   :  { %v286_v61 = vpop.permute.xlu1 %285  ;;  %v281_v7 = vpop.permute.xlu0 %280 }
  0x8e   :  { %v276_v18 = vpop.permute.xlu1 %275  ;;  %v271_v22 = vpop.permute.xlu0 %270 }
  0x92   :  { %v383_v34 = vpop.permute.xlu1 %382  ;;  %v378_v36 = vpop.permute.xlu0 %377 }
  0x96   :  { %v373_v39 = vpop.permute.xlu1 %372 }
  0xc8   :  { %v811_v40 = vpop.f32.mrf.mxu0 }
  0xc9   :  { %v821_v41 = vpop.f32.mrf.mxu1 }
  0xca   :  { %v127_v43 = vpop.f32.mrf.mxu0  ;;  %v238_v0 = vadd.f32 %v821_v41, %v811_v40  ;;  %v368_v41 = vpop.permute.xlu0 %367 }
  0xcb   :  { %v229_v44 = vpop.f32.mrf.mxu1 }
  0xcc   :  { %v812_v46 = vpop.f32.mrf.mxu0  ;;  %v310_v13 = vadd.f32 %v281_v7, %v238_v0  ;;  %v230_v14 = vadd.f32 %v229_v44, %v127_v43  ;;  %v887_v7 = vld [vmem:[%s1135_s7 + $0x8] sm:$0x1f]  }
  0xcd   :  { %v822_v47 = vpop.f32.mrf.mxu1 }
  0xce   :  { %v130_v48 = vpop.f32.mrf.mxu0  ;;  %v241_v58 = vadd.f32 %v822_v47, %v812_v46  ;;  %v318_v23 = vmax.f32 %v310_v13, 0.0  ;;  %v308_v24 = vadd.f32 %v271_v22, %v230_v14  ;;  %v363_v46 = vpop.permute.xlu1 %362 }
  0xcf   :  { %v232_v49 = vpop.f32.mrf.mxu1 }
  0xd0   :  { %v815_v51 = vpop.f32.mrf.mxu0  ;;  %v311_v8 = vadd.f32 %v286_v61, %v241_v58  ;;  %v233_v9 = vadd.f32 %v232_v49, %v130_v48  ;;  %v316_v27 = vmax.f32 %v308_v24, 0.0 }
  0xd1   :  { %v825_v52 = vpop.f32.mrf.mxu1 }
  0xd2   :  { %v254_v54 = vadd.f32 %v825_v52, %v815_v51  ;;  %v143_v55 = vpop.f32.mrf.mxu0  ;;  %v319_v19 = vmax.f32 %v311_v8, 0.0  ;;  %v309_v20 = vadd.f32 %v276_v18, %v233_v9  ;;  %v358_v52 = vpop.permute.xlu0 %357 }
  0xd3   :  { %v245_v56 = vpop.f32.mrf.mxu1  ;;  %v353_v58 = vpop.permute.xlu1 %352 }
  0xd4   :  { %v246_v57 = vadd.f32 %v245_v56, %v143_v55  ;;  %v816_v59 = vpop.f32.mrf.mxu0  ;;  %v314_v62 = vadd.f32 %v301_v45, %v254_v54  ;;  %v317_v25 = vmax.f32 %v309_v20, 0.0  ;;  %v325_v26 = vpack.c.bf16 %v319_v19, %v318_v23 }
  0xd5   :  { %v826_v60 = vpop.f32.mrf.mxu1 }
  0xd6   :  { %v257_v63 = vadd.f32 %v826_v60, %v816_v59  ;;  %v146_v2 = vpop.f32.mrf.mxu0  ;;  %v312_v4 = vadd.f32 %v291_v42, %v246_v57  ;;  %v322_v10 = vmax.f32 %v314_v62, 0.0  ;;  %v324_v28 = vpack.c.bf16 %v317_v25, %v316_v27  ;;  %v348_v62 = vpop.permute.xlu0 %347 }
  0xd7   :  { %v248_v3 = vpop.f32.mrf.mxu1  ;;  %v572_v9 = vpop.permute.xlu1 %571 }
  0xd8   :  { %v315_v5 = vadd.f32 %v306_v53, %v257_v63  ;;  %v249_v6 = vadd.f32 %v248_v3, %v146_v2  ;;  %v320_v15 = vmax.f32 %v312_v4, 0.0 }
  0xda   :  { %v323_v11 = vmax.f32 %v315_v5, 0.0  ;;  %v313_v12 = vadd.f32 %v296_v50, %v249_v6  ;;  %v886_v6 = vld [vmem:[%s1135_s7] sm:$0x1f]   ;;  %v567_v8 = vpop.permute.xlu0 %566 }
  0xdb   :  { %v637_v19 = vpop.permute.xlu1 %636 }
  0xdc   :  { %v321_v16 = vmax.f32 %v313_v12, 0.0  ;;  %v327_v17 = vpack.c.bf16 %v323_v11, %v322_v10 }
  0xde   :  { %827 = vmatprep.subr.bf16.mxu0 %v327_v17  ;;  %v326_v21 = vpack.c.bf16 %v321_v16, %v320_v15  ;;  %v632_v12 = vpop.permute.xlu0 %631 }
  0xdf   :  { %828 = vmatpush3.bf16.msra.mxu0 %v327_v17 }
  0xe0   :  { %829 = vmatprep.subr.bf16.mxu0 %v326_v21 }
  0xe3   :  { %830 = vmatpush3.bf16.msra.mxu0 %v326_v21 }
  0xe4   :  { %831 = vmatprep.subr.bf16.mxu0 %v325_v26 }
  0xe7   :  { %832 = vmatpush3.bf16.msra.mxu0 %v325_v26 }
  0xe8   :  { %833 = vmatprep.subr.bf16.mxu0 %v324_v28 }
  0xeb   :  { %834 = vmatpush3.bf16.msra.mxu0 %v324_v28 }
  0xec   :  { %855 = vmatprep.subr.bf16.mxu0 %v909_v32 }
  0xee   :  { %836 = vmatmul.mubr.msk.bf16.vlgmr.msra.gmra.mxu0 %vm405_vm4, %v883_v29 }
  0xef   :  { %839 = vmatprep.mubr.msk.bf16.mxu0 %vm405_vm4, %v884_v30 }
  0xf6   :  { %840 = vmatmul.mubr.msk.bf16.gmra.mxu0 %vm405_vm4, %v885_v31 }
  0xf7   :  { %863 = vmatprep.mubr.msk.bf16.mxu0 %vm910_vm5, %v909_v32 }
 0x1ae   :  { %v837_v33 = vpop.f32.mrf.mxu0 }
 0x1af   :  { %v461_v56 = vadd.f32 %v837_v33, %v358_v52 }
 0x1b0   :  { %v452_v35 = vpop.f32.mrf.mxu0 }
 0x1b1   :  { %v485_v63 = vmax.f32 %v461_v56, 0.0  ;;  %v453_v0 = vadd.f32 %v452_v35, %v348_v62 }
 0x1b2   :  { %v838_v37 = vpop.f32.mrf.mxu0 }
 0x1b3   :  { %v464_v53 = vadd.f32 %v838_v37, %v363_v46  ;;  %v483_v4 = vmax.f32 %v453_v0, 0.0 }
 0x1b4   :  { %v455_v38 = vpop.f32.mrf.mxu0 }
 0x1b5   :  { %v486_v59 = vmax.f32 %v464_v53, 0.0  ;;  %v456_v60 = vadd.f32 %v455_v38, %v353_v58 }
 0x1b6   :  { %v841_v40 = vpop.f32.mrf.mxu0 }
 0x1b7   :  { %v477_v43 = vadd.f32 %v841_v40, %v378_v36  ;;  %v492_v2 = vpack.c.bf16 %v486_v59, %v485_v63  ;;  %v484_v3 = vmax.f32 %v456_v60, 0.0 }
 0x1b8   :  { %v468_v42 = vpop.f32.mrf.mxu0 }
 0x1b9   :  { %v489_v48 = vmax.f32 %v477_v43, 0.0  ;;  %v469_v49 = vadd.f32 %v468_v42, %v368_v41  ;;  %v491_v5 = vpack.c.bf16 %v484_v3, %v483_v4 }
 0x1ba   :  { %v842_v44 = vpop.f32.mrf.mxu0 }
 0x1bb   :  { %v480_v45 = vadd.f32 %v842_v44, %v383_v34  ;;  %v487_v57 = vmax.f32 %v469_v49, 0.0 }
 0x1bc   :  { %v471_v47 = vpop.f32.mrf.mxu0 }
 0x1bd   :  { %v490_v50 = vmax.f32 %v480_v45, 0.0  ;;  %v472_v51 = vadd.f32 %v471_v47, %v373_v39 }
 0x1bf   :  { %v494_v54 = vpack.c.bf16 %v490_v50, %v489_v48  ;;  %v488_v55 = vmax.f32 %v472_v51, 0.0  ;;  %v676_v51 = vpop.permute.xlu0 %675 }
 0x1c1   :  { %844 = vmatpush3.bf16.msra.mxu1 %v494_v54  ;;  %856 = vmatpush3.bf16.msra.mxu0 %v494_v54  ;;  %v493_v61 = vpack.c.bf16 %v488_v55, %v487_v57  ;;  %v681_v57 = vpop.permute.xlu1 %680 }
 0x1c2   :  { %845 = vmatprep.subr.bf16.mxu1 %v909_v32  ;;  %857 = vmatprep.subr.bf16.mxu0 %v909_v32 }
 0x1c5   :  { %846 = vmatpush3.bf16.msra.mxu1 %v493_v61  ;;  %858 = vmatpush3.bf16.msra.mxu0 %v493_v61 }
 0x1c6   :  { %847 = vmatprep.subr.bf16.mxu1 %v909_v32  ;;  %859 = vmatprep.subr.bf16.mxu0 %v909_v32 }
 0x1c9   :  { %848 = vmatpush3.bf16.msra.mxu1 %v492_v2  ;;  %860 = vmatpush3.bf16.msra.mxu0 %v492_v2 }
 0x1ca   :  { %849 = vmatprep.subr.bf16.mxu1 %v909_v32  ;;  %861 = vmatprep.subr.bf16.mxu0 %v909_v32 }
 0x1cd   :  { %850 = vmatpush3.bf16.msra.mxu1 %v491_v5  ;;  %862 = vmatpush3.bf16.msra.mxu0 %v491_v5 }
 0x1d0   :  { %852 = vmatmul.mubr.msk.bf16.vlgmr.msra.gmra.mxu1 %vm405_vm4, %v886_v6  ;;  %864 = vmatmul.mubr.msk.bf16.vlgmr.msra.gmra.mxu0 %vm405_vm4, %v887_v7 }
 0x290   :  { %v1108_v10 = vpop.f32.mrf.mxu1  ;;  %v616_v11 = vpop.f32.mrf.mxu0 }
 0x291   :  { %v617_v13 = vadd.f32 %v616_v11, %v567_v8 }
 0x292   :  { %v853_v14 = vpop.f32.mrf.mxu1  ;;  %v865_v15 = vpop.f32.mrf.mxu0 }
 0x293   :  { %v639_v16 = vsub.f32 %v632_v12, %v617_v13 }
 0x294   :  { %v1110_v17 = vpop.f32.mrf.mxu1  ;;  %v619_v18 = vpop.f32.mrf.mxu0 }
 0x295   :  { %v643_v20 = vand.u32 2147483647, %v639_v16  ;;  %v620_v21 = vadd.f32 %v619_v18, %v572_v9  ;;  %v641_v42 = vmax.f32 %v639_v16, 0.0 }
 0x296   :  { %v866_v22 = vpop.f32.mrf.mxu0  ;;  %v854_v23 = vpop.f32.mrf.mxu1 }
 0x297   :  { %v645_v24 = vsub.f32 0.0, %v643_v20  ;;  %v640_v25 = vsub.f32 %v637_v19, %v620_v21 }
 0x299   :  { %v647_v26 = vmul.f32 1.442695, %v645_v24  ;;  %v644_v27 = vand.u32 2147483647, %v640_v25  ;;  %v642_v50 = vmax.f32 %v640_v25, 0.0 }
 0x29b   :  { %888 = vpow2.f32 %v647_v26  ;;  %v646_v28 = vsub.f32 0.0, %v644_v27 }
 0x29d   :  { %v649_v29 = vmul.f32 1.442695, %v646_v28 }
 0x29f   :  { %890 = vpow2.f32 %v649_v29  ;;  %v502_v29 = vpop.permute.xlu0 %501 }
 0x2a8   :  { %v889_v30 = vpop.eup %888 }
 0x2a9   :  { %v651_v31 = vadd.f32 1.0, %v889_v30  ;;  %v654_v34 = vmul.f32 -0.5, %v889_v30  ;;  %v657_v37 = vand.u32 2147483647, %v889_v30 }
 0x2ab   :  { %892 = vlog2.f32 %v651_v31  ;;  %v655_v35 = vadd.f32 1.0, %v654_v34  ;;  %vm658_vm6 = vcmp.lt.f32.partialorder %v657_v37, 0.0004427343  ;;  %v722_v31 = vld [vmem:[%s1136_s2] sm:$0xff] }
 0x2ac   :  { %v891_v32 = vpop.eup %890 }
 0x2ad   :  { %v660_v33 = vadd.f32 1.0, %v891_v32  ;;  %v663_v36 = vmul.f32 -0.5, %v891_v32  ;;  %v656_v40 = vmul.f32 %v889_v30, %v655_v35  ;;  %v666_v43 = vand.u32 2147483647, %v891_v32  ;;  %v726_v35 = vld [vmem:[%s1137_s3] sm:$0x1] }
 0x2ae   :  { %v552_v30 = vadd.f32 %v1108_v10, %v502_v29 }
 0x2af   :  { %894 = vlog2.f32 %v660_v33  ;;  %v664_v41 = vadd.f32 1.0, %v663_v36  ;;  %vm667_vm7 = vcmp.lt.f32.partialorder %v666_v43, 0.0004427343 }
 0x2b0   :  { %v721_v33 = vadd.f32 %v552_v30, %v972_v1 }
 0x2b1   :  { %v665_v48 = vmul.f32 %v891_v32, %v664_v41 }
 0x2b8   :  { %v893_v38 = vpop.eup %892 }
 0x2b9   :  { %v653_v39 = vmul.f32 0.6931472, %v893_v38  ;;  %v507_v38 = vpop.permute.xlu1 %506 }
 0x2ba   :  { %v555_v10 = vadd.f32 %v1110_v17, %v507_v38 }
 0x2bb   :  { %v659_v44 = vsel %vm658_vm6, %v656_v40, %v653_v39 }
 0x2bc   :  { %v895_v45 = vpop.eup %894  ;;  %v669_v46 = vadd.f32 %v659_v44, %v641_v42 }
 0x2bd   :  { %v662_v47 = vmul.f32 0.6931472, %v895_v45 }
 0x2be   :  { %v671_v49 = vsub.f32 %v632_v12, %v669_v46 }
 0x2bf   :  { %v668_v52 = vsel %vm667_vm7, %v665_v48, %v662_v47 }
 0x2c0   :  { %v683_v53 = vsub.f32 %v671_v49, %v676_v51  ;;  %v670_v54 = vadd.f32 %v668_v52, %v642_v50 }
 0x2c2   :  { %v687_v55 = vand.u32 2147483647, %v683_v53  ;;  %v672_v56 = vsub.f32 %v637_v19, %v670_v54  ;;  %v685_v14 = vmax.f32 %v683_v53, 0.0 }
 0x2c4   :  { %v689_v58 = vsub.f32 0.0, %v687_v55  ;;  %v684_v59 = vsub.f32 %v672_v56, %v681_v57 }
 0x2c6   :  { %v691_v60 = vmul.f32 1.442695, %v689_v58  ;;  %v688_v61 = vand.u32 2147483647, %v684_v59  ;;  %v686_v23 = vmax.f32 %v684_v59, 0.0 }
 0x2c8   :  { %896 = vpow2.f32 %v691_v60  ;;  %v690_v62 = vsub.f32 0.0, %v688_v61 }
 0x2ca   :  { %v693_v63 = vmul.f32 1.442695, %v690_v62 }
 0x2cc   :  { %898 = vpow2.f32 %v693_v63 }
 0x2d5   :  { %v897_v0 = vpop.eup %896 }
 0x2d6   :  { %v695_v2 = vadd.f32 1.0, %v897_v0  ;;  %v698_v5 = vmul.f32 -0.5, %v897_v0  ;;  %v701_v8 = vand.u32 2147483647, %v897_v0 }
 0x2d8   :  { %900 = vlog2.f32 %v695_v2  ;;  %v699_v6 = vadd.f32 1.0, %v698_v5  ;;  %vm702_vm8 = vcmp.lt.f32.partialorder %v701_v8, 0.0004427343 }
 0x2d9   :  { %v899_v3 = vpop.eup %898 }
 0x2da   :  { %v704_v4 = vadd.f32 1.0, %v899_v3  ;;  %v707_v7 = vmul.f32 -0.5, %v899_v3  ;;  %v700_v12 = vmul.f32 %v897_v0, %v699_v6  ;;  %v710_v15 = vand.u32 2147483647, %v899_v3 }
 0x2dc   :  { %902 = vlog2.f32 %v704_v4  ;;  %v708_v13 = vadd.f32 1.0, %v707_v7  ;;  %vm711_vm9 = vcmp.lt.f32.partialorder %v710_v15, 0.0004427343 }
 0x2de   :  { %v709_v21 = vmul.f32 %v899_v3, %v708_v13 }
 0x2e5   :  { %v901_v9 = vpop.eup %900 }
 0x2e6   :  { %v697_v11 = vmul.f32 0.6931472, %v901_v9 }
 0x2e8   :  { %v703_v16 = vsel %vm702_vm8, %v700_v12, %v697_v11 }
 0x2e9   :  { %v903_v18 = vpop.eup %902  ;;  %v713_v19 = vadd.f32 %v703_v16, %v685_v14 }
 0x2ea   :  { %v706_v20 = vmul.f32 0.6931472, %v903_v18 }
 0x2eb   :  { %v715_v22 = vadd.f32 %v713_v19, %v676_v51 }
 0x2ec   :  { %v712_v24 = vsel %vm711_vm9, %v709_v21, %v706_v20 }
 0x2ed   :  { %v717_v25 = vmul.f32 1.442695, %v715_v22  ;;  %v714_v26 = vadd.f32 %v712_v24, %v686_v23 }
 0x2ef   :  { %904 = vpow2.f32 %v717_v25  ;;  %v716_v27 = vadd.f32 %v714_v26, %v681_v57 }
 0x2f1   :  { %v719_v28 = vmul.f32 1.442695, %v716_v27 }
 0x2f3   :  { %906 = vpow2.f32 %v719_v28 }
 0x2fc   :  { %v905_v32 = vpop.eup %904 }
 0x2fd   :  { %v723_v34 = vmul.f32 %v905_v32, %v722_v31 }
 0x2ff   :  { %v724_v36 = vadd.f32 %v723_v34, %v721_v33 }
 0x300   :  { %v907_v37 = vpop.eup %906 }
 0x301   :  { %725 = vst.msk [vmem:[%s1138_s10] sm:$0xff] %vm178_vm3, %v724_v36  ;;  %v727_v39 = vmul.f32 %v907_v37, %v726_v35 }
 0x303   :  { %v728_v40 = vadd.f32 %v727_v39, %v555_v10 }
 0x305   :  { %730 = vst.msk [vmem:[%s1138_s10 + $0x8] sm:$0x1] %vm729_vm10, %v728_v40 }

</bundles_post_ra>
